<compile_context>
chip_gen: v7x
topology: tpu7x:2x2x1
jax: 0.10.0
libtpu: 0.0.40
codegen_flags: <defaults>
</compile_context>

<pallas_src>
import functools
import math

import jax
import jax.numpy as jnp
from jax.experimental import pallas as pl
from jax.experimental.pallas import tpu as pltpu

LANES = 128
SUBLANES = 8
EXPONENT = 1.0 / 2.33

MAX_TILE_ROWS = 4096                  # 4096 x 128 x f32 = 2 MiB per input tile
SLAB_BUDGET_BYTES = 24 * 1024 * 1024  # resident clamped-input slab budget
VMEM_LIMIT_BYTES = 48 * 1024 * 1024   # <= 64 MiB physical VMEM on v7x


def _shader_kernel(x_ref, o_ref, slab, acc_min, acc_max, stats, *, use_slab):
    p = pl.program_id(0)          # phase: 0 = min/max sweep, 1 = shade sweep
    i = pl.program_id(1)          # tile index
    last = pl.num_programs(1) - 1

    @pl.when(jnp.logical_and(p == 0, i == 0))
    def _():
        acc_min[...] = jnp.full(acc_min.shape, jnp.inf, dtype=acc_min.dtype)
        acc_max[...] = jnp.full(acc_max.shape, -jnp.inf, dtype=acc_max.dtype)

    @pl.when(p == 0)
    def _():
        # Streaming min/max of the clamped raw input (no per-element log here).
        x = jnp.maximum(x_ref[...].astype(jnp.float32), 0.01)
        if use_slab:
            slab[i] = x           # stash clamped f32 tile for phase 1 (VMEM)
        xg = x.reshape(-1, SUBLANES, LANES)          # vreg-shaped groups
        acc_min[...] = jnp.minimum(acc_min[...], xg.min(axis=0))
        acc_max[...] = jnp.maximum(acc_max[...], xg.max(axis=0))

        @pl.when(i == last)
        def _():
            # Vector log of the single-vreg accumulators, one cross-lane
            # reduce each, then hoist the reciprocal once into SMEM.
            lo = jnp.min(jnp.log(acc_min[...]))
            hi = jnp.max(jnp.log(acc_max[...]))
            stats[0] = lo
            # NOTE: hi == lo (constant input) -> inf -> NaN output, same as
            # the PyTorch reference.
            stats[1] = 1.0 / (hi - lo)

    @pl.when(p == 1)
    def _():
        lo = stats[0]
        inv = stats[1]
        if use_slab:
            x = slab[i]                                         # VMEM re-read
        else:
            x = jnp.maximum(x_ref[...].astype(jnp.float32), 0.01)  # HBM re-read
        t = (jnp.log(x) - lo) * inv
        # Guard: the hardware log approximation is not bit-monotone, so the
        # min element could land epsilon-negative; negative ** 0.429 -> NaN.
        t = jnp.maximum(t, 0.0)
        o_ref[...] = (t ** EXPONENT).astype(o_ref.dtype)


def proximity_shader(surface_distances: jax.Array, *,
                     max_tile_rows: int = MAX_TILE_ROWS,
                     slab_budget_bytes: int = SLAB_BUDGET_BYTES) -> jax.Array:
    """Pallas TPU implementation of ProximityShader.forward."""
    orig_shape = surface_distances.shape
    orig_dtype = surface_distances.dtype
    n = int(math.prod(orig_shape))

    # Keep the second-minor tile dim a multiple of the packed-sublane count so
    # sub-32-bit outputs stay layout-friendly.
    itemsize = jnp.dtype(orig_dtype).itemsize
    row_align = SUBLANES * max(1, 4 // itemsize)

    rows = pl.cdiv(n, LANES)
    num_tiles = pl.cdiv(rows, max_tile_rows)
    tile_rows = pl.cdiv(pl.cdiv(rows, num_tiles), row_align) * row_align
    rows_padded = num_tiles * tile_rows

    flat = jnp.ravel(surface_distances)        # keep native dtype
    pad = rows_padded * LANES - n
    if pad:
        # Edge padding duplicates a real element -> min/max-neutral, no masks.
        flat = jnp.pad(flat, (0, pad), mode="edge")
    x2d = flat.reshape(rows_padded, LANES)

    use_slab = rows_padded * LANES * 4 <= slab_budget_bytes
    slab_shape = (num_tiles, tile_rows, LANES) if use_slab else (1, SUBLANES, LANES)

    if use_slab:
        # Phase 1 never touches HBM input again -> pin the window to block 0.
        in_map = lambda p, i: (i * (1 - p), 0)
    else:
        in_map = lambda p, i: (i, 0)

    out2d = pl.pallas_call(
        functools.partial(_shader_kernel, use_slab=use_slab),
        out_shape=jax.ShapeDtypeStruct((rows_padded, LANES), orig_dtype),
        grid=(2, num_tiles),
        in_specs=[pl.BlockSpec((tile_rows, LANES), in_map)],
        # Phase 0 maps every step to block 0 (never written there); phase 1
        # writes the real blocks, so write-back only happens with valid data.
        out_specs=pl.BlockSpec((tile_rows, LANES), lambda p, i: (i * p, 0)),
        scratch_shapes=[
            pltpu.VMEM(slab_shape, jnp.float32),        # clamped-input slab
            pltpu.VMEM((SUBLANES, LANES), jnp.float32),  # min accumulator
            pltpu.VMEM((SUBLANES, LANES), jnp.float32),  # max accumulator
            pltpu.SMEM((2,), jnp.float32),               # [lo, 1/(hi-lo)]
        ],
        compiler_params=pltpu.CompilerParams(
            dimension_semantics=("arbitrary", "arbitrary"),
            vmem_limit_bytes=VMEM_LIMIT_BYTES),
    )(x2d)

    if pad:
        # One extra slice pass only for lane-unaligned shapes (rare for NCHW).
        return out2d.reshape(-1)[:n].reshape(orig_shape)
    return out2d.reshape(orig_shape)


def _reference(surface_distances: jax.Array) -> jax.Array:
    log_dists = jnp.log(jnp.clip(surface_distances.astype(jnp.float32),
                                 0.01, jnp.inf))
    lo = jnp.min(log_dists)
    hi = jnp.max(log_dists)
    return (((log_dists - lo) / (hi - lo)) ** EXPONENT).astype(
        surface_distances.dtype)


if __name__ == "__main__":
    key = jax.random.PRNGKey(0)
    # surface distances (depth-like map), NCHW: batch=2, channels=4, 16x16
    x = jax.random.uniform(key, (2, 4, 16, 16), dtype=jnp.float32,
                           minval=0.0, maxval=5.0)
    ref = _reference(x)

    # default path: single tile, VMEM slab (2N HBM traffic)
    out = jax.block_until_ready(proximity_shader(x))
    assert out.shape == x.shape and out.dtype == x.dtype
    assert jnp.allclose(out, ref, atol=2e-5, rtol=2e-5), "slab path mismatch"

    # forced multi-tile, HBM re-read path (3N traffic)
    out2 = jax.block_until_ready(
        proximity_shader(x, max_tile_rows=8, slab_budget_bytes=0))
    assert jnp.allclose(out2, ref, atol=2e-5, rtol=2e-5), "streamed path mismatch"

    # lane-unaligned shape -> edge padding, sliced epilogue
    x3 = jax.random.uniform(jax.random.PRNGKey(1), (3, 5, 7),
                            dtype=jnp.float32, minval=0.0, maxval=5.0)
    ref3 = _reference(x3)
    out3 = jax.block_until_ready(proximity_shader(x3))
    assert out3.shape == x3.shape and out3.dtype == x3.dtype
    assert jnp.allclose(out3, ref3, atol=2e-5, rtol=2e-5), "ragged slab mismatch"
    out4 = jax.block_until_ready(proximity_shader(x3, slab_budget_bytes=0))
    assert jnp.allclose(out4, ref3, atol=2e-5, rtol=2e-5), "ragged streamed mismatch"

    print("KERNEL_OK")
</pallas_src>

<mosaic_0001>
module attributes {stable_mosaic.version = 11 : i64} {
  func.func @_shader_kernel(%arg0: i32, %arg1: i32, %arg2: memref<16x128xf32, #tpu.memory_space<vmem>>, %arg3: memref<16x128xf32, #tpu.memory_space<vmem>>, %arg4: memref<1x16x128xf32, #tpu.memory_space<vmem>>, %arg5: memref<8x128xf32, #tpu.memory_space<vmem>>, %arg6: memref<8x128xf32, #tpu.memory_space<vmem>>, %arg7: memref<2xf32, #tpu.memory_space<smem>>) attributes {dimension_semantics = [#tpu.dimension_semantics<arbitrary>, #tpu.dimension_semantics<arbitrary>], iteration_bounds = array<i64: 2, 1>, scalar_prefetch = 0 : i64, scratch_operands = 4 : i64, tpu.core_type = #tpu.core_type<tc>, window_params = [{transform_indices = @transform_0, window_bounds = array<i64: 16, 128>}, {transform_indices = @transform_1, window_bounds = array<i64: 16, 128>}]} {
    %c0_i32 = arith.constant 0 : i32
    %0 = arith.cmpi eq, %arg0, %c0_i32 : i32
    %c0_i32_0 = arith.constant 0 : i32
    %1 = arith.cmpi eq, %arg1, %c0_i32_0 : i32
    %2 = arith.andi %0, %1 : i1
    %3 = arith.extui %2 : i1 to i32
    %c0_i32_1 = arith.constant 0 : i32
    %4 = arith.cmpi ne, %3, %c0_i32_1 : i32
    scf.if %4 {
      %cst = arith.constant 0x7F800000 : f32
      %11 = vector.broadcast %cst : f32 to vector<8x128xf32>
      %c0 = arith.constant 0 : index
      %c0_5 = arith.constant 0 : index
      %12 = vector.load %arg5[%c0, %c0_5] : memref<8x128xf32, #tpu.memory_space<vmem>>, vector<8x128xf32>
      tpu.vector_store %arg5[%c0, %c0_5], %11 {strides = array<i32>} : memref<8x128xf32, #tpu.memory_space<vmem>>, vector<8x128xf32>,
      %cst_6 = arith.constant 0xFF800000 : f32
      %13 = vector.broadcast %cst_6 : f32 to vector<8x128xf32>
      %c0_7 = arith.constant 0 : index
      %c0_8 = arith.constant 0 : index
      %14 = vector.load %arg6[%c0_7, %c0_8] : memref<8x128xf32, #tpu.memory_space<vmem>>, vector<8x128xf32>
      tpu.vector_store %arg6[%c0_7, %c0_8], %13 {strides = array<i32>} : memref<8x128xf32, #tpu.memory_space<vmem>>, vector<8x128xf32>,
    } else {
    }
    %c0_i32_2 = arith.constant 0 : i32
    %5 = arith.cmpi eq, %arg0, %c0_i32_2 : i32
    %6 = arith.extui %5 : i1 to i32
    %c0_i32_3 = arith.constant 0 : i32
    %7 = arith.cmpi ne, %6, %c0_i32_3 : i32
    scf.if %7 {
      %c0 = arith.constant 0 : index
      %c0_5 = arith.constant 0 : index
      %11 = vector.load %arg2[%c0, %c0_5] : memref<16x128xf32, #tpu.memory_space<vmem>>, vector<16x128xf32>
      %cst = arith.constant 0.00999999977 : f32
      %12 = vector.broadcast %cst : f32 to vector<16x128xf32>
      %13 = arith.maximumf %11, %12 : vector<16x128xf32>
      %14 = arith.index_cast %arg1 : i32 to index
      %c0_6 = arith.constant 0 : index
      %c0_7 = arith.constant 0 : index
      %15 = vector.load %arg4[%14, %c0_6, %c0_7] : memref<1x16x128xf32, #tpu.memory_space<vmem>>, vector<1x16x128xf32>
      %16 = vector.shape_cast %15 : vector<1x16x128xf32> to vector<16x128xf32>
      %17 = vector.shape_cast %13 : vector<16x128xf32> to vector<1x16x128xf32>
      tpu.vector_store %arg4[%14, %c0_6, %c0_7], %17 {strides = array<i32>} : memref<1x16x128xf32, #tpu.memory_space<vmem>>, vector<1x16x128xf32>,
      %18 = vector.shape_cast %13 : vector<16x128xf32> to vector<2x8x128xf32>
      %c0_8 = arith.constant 0 : index
      %c0_9 = arith.constant 0 : index
      %19 = vector.load %arg5[%c0_8, %c0_9] : memref<8x128xf32, #tpu.memory_space<vmem>>, vector<8x128xf32>
      %cst_10 = arith.constant dense<0x7F800000> : vector<8x128xf32>
      %20 = vector.multi_reduction <minimumf>, %18, %cst_10 [0] : vector<2x8x128xf32> to vector<8x128xf32>
      %21 = arith.minimumf %19, %20 : vector<8x128xf32>
      %c0_11 = arith.constant 0 : index
      %c0_12 = arith.constant 0 : index
      %22 = vector.load %arg5[%c0_11, %c0_12] : memref<8x128xf32, #tpu.memory_space<vmem>>, vector<8x128xf32>
      tpu.vector_store %arg5[%c0_11, %c0_12], %21 {strides = array<i32>} : memref<8x128xf32, #tpu.memory_space<vmem>>, vector<8x128xf32>,
      %c0_13 = arith.constant 0 : index
      %c0_14 = arith.constant 0 : index
      %23 = vector.load %arg6[%c0_13, %c0_14] : memref<8x128xf32, #tpu.memory_space<vmem>>, vector<8x128xf32>
      %cst_15 = arith.constant dense<0xFF800000> : vector<8x128xf32>
      %24 = vector.multi_reduction <maximumf>, %18, %cst_15 [0] : vector<2x8x128xf32> to vector<8x128xf32>
      %25 = arith.maximumf %23, %24 : vector<8x128xf32>
      %c0_16 = arith.constant 0 : index
      %c0_17 = arith.constant 0 : index
      %26 = vector.load %arg6[%c0_16, %c0_17] : memref<8x128xf32, #tpu.memory_space<vmem>>, vector<8x128xf32>
      tpu.vector_store %arg6[%c0_16, %c0_17], %25 {strides = array<i32>} : memref<8x128xf32, #tpu.memory_space<vmem>>, vector<8x128xf32>,
      %c0_i32_18 = arith.constant 0 : i32
      %27 = arith.cmpi eq, %arg1, %c0_i32_18 : i32
      %28 = arith.extui %27 : i1 to i32
      %c0_i32_19 = arith.constant 0 : i32
      %29 = arith.cmpi ne, %28, %c0_i32_19 : i32
      scf.if %29 {
        %c0_20 = arith.constant 0 : index
        %c0_21 = arith.constant 0 : index
        %30 = vector.load %arg5[%c0_20, %c0_21] : memref<8x128xf32, #tpu.memory_space<vmem>>, vector<8x128xf32>
        %31 = math.log %30 : vector<8x128xf32>
        %32 = vector.shape_cast %31 : vector<8x128xf32> to vector<1x8x128xf32>
        %cst_22 = arith.constant dense<0x7F800000> : vector<1xf32>
        %33 = vector.multi_reduction <minimumf>, %32, %cst_22 [1, 2] : vector<1x8x128xf32> to vector<1xf32>
        %34 = vector.shape_cast %33 : vector<1xf32> to vector<1x1x1xf32>
        %35 = vector.extract %34[0, 0, 0] : f32 from vector<1x1x1xf32>
        %c0_23 = arith.constant 0 : index
        %c0_24 = arith.constant 0 : index
        %36 = vector.load %arg6[%c0_23, %c0_24] : memref<8x128xf32, #tpu.memory_space<vmem>>, vector<8x128xf32>
        %37 = math.log %36 : vector<8x128xf32>
        %38 = vector.shape_cast %37 : vector<8x128xf32> to vector<1x8x128xf32>
        %cst_25 = arith.constant dense<0xFF800000> : vector<1xf32>
        %39 = vector.multi_reduction <maximumf>, %38, %cst_25 [1, 2] : vector<1x8x128xf32> to vector<1xf32>
        %40 = vector.shape_cast %39 : vector<1xf32> to vector<1x1x1xf32>
        %41 = vector.extract %40[0, 0, 0] : f32 from vector<1x1x1xf32>
        %c0_26 = arith.constant 0 : index
        %42 = memref.load %arg7[%c0_26] : memref<2xf32, #tpu.memory_space<smem>>
        memref.store %35, %arg7[%c0_26] : memref<2xf32, #tpu.memory_space<smem>>
        %43 = arith.subf %41, %35 : f32
        %cst_27 = arith.constant 1.000000e+00 : f32
        %44 = arith.divf %cst_27, %43 : f32
        %c1 = arith.constant 1 : index
        %45 = memref.load %arg7[%c1] : memref<2xf32, #tpu.memory_space<smem>>
        memref.store %44, %arg7[%c1] : memref<2xf32, #tpu.memory_space<smem>>
      } else {
      }
    } else {
    }
    %c1_i32 = arith.constant 1 : i32
    %8 = arith.cmpi eq, %arg0, %c1_i32 : i32
    %9 = arith.extui %8 : i1 to i32
    %c0_i32_4 = arith.constant 0 : i32
    %10 = arith.cmpi ne, %9, %c0_i32_4 : i32
    scf.if %10 {
      %c0 = arith.constant 0 : index
      %11 = memref.load %arg7[%c0] : memref<2xf32, #tpu.memory_space<smem>>
      %c1 = arith.constant 1 : index
      %12 = memref.load %arg7[%c1] : memref<2xf32, #tpu.memory_space<smem>>
      %13 = arith.index_cast %arg1 : i32 to index
      %c0_5 = arith.constant 0 : index
      %c0_6 = arith.constant 0 : index
      %14 = vector.load %arg4[%13, %c0_5, %c0_6] : memref<1x16x128xf32, #tpu.memory_space<vmem>>, vector<1x16x128xf32>
      %15 = vector.shape_cast %14 : vector<1x16x128xf32> to vector<16x128xf32>
      %16 = math.log %15 : vector<16x128xf32>
      %17 = vector.broadcast %11 : f32 to vector<16x128xf32>
      %18 = arith.subf %16, %17 : vector<16x128xf32>
      %19 = vector.broadcast %12 : f32 to vector<16x128xf32>
      %20 = arith.mulf %18, %19 : vector<16x128xf32>
      %cst = arith.constant 0.000000e+00 : f32
      %21 = vector.broadcast %cst : f32 to vector<16x128xf32>
      %22 = arith.maximumf %20, %21 : vector<16x128xf32>
      %cst_7 = arith.constant 0.429184556 : f32
      %23 = vector.broadcast %cst_7 : f32 to vector<16x128xf32>
      %24 = math.powf %22, %23 : vector<16x128xf32>
      %c0_8 = arith.constant 0 : index
      %c0_9 = arith.constant 0 : index
      %25 = vector.load %arg3[%c0_8, %c0_9] : memref<16x128xf32, #tpu.memory_space<vmem>>, vector<16x128xf32>
      tpu.vector_store %arg3[%c0_8, %c0_9], %24 {strides = array<i32>} : memref<16x128xf32, #tpu.memory_space<vmem>>, vector<16x128xf32>,
    } else {
    }
    return
  }
  func.func @transform_0(%arg0: i32, %arg1: i32) -> (i32, i32) {
    %c1_i32 = arith.constant 1 : i32
    %0 = arith.subi %c1_i32, %arg0 : i32
    %1 = arith.muli %arg1, %0 : i32
    %c0_i32 = arith.constant 0 : i32
    %c0_i32_0 = arith.constant 0 : i32
    return %1, %c0_i32 : i32, i32
  }
  func.func @transform_1(%arg0: i32, %arg1: i32) -> (i32, i32) {
    %0 = arith.muli %arg1, %arg0 : i32
    %c0_i32 = arith.constant 0 : i32
    %c0_i32_0 = arith.constant 0 : i32
    return %0, %c0_i32 : i32, i32
  }
}

</mosaic_0001>

<bundles_post_ra>
// kernel: tpu_custom_call.1
= control target key start
LH: loop header
LB: loop body
LE: loop exit
PB: predicated region body
PF: predicated region fallthrough
CT: control target
= control target key end

     0   :  { %6 = vsyncpa [#allocation7], 0  ;;  %s687_s0 = inlined_call_operand.hbm [shape: f32[16,128], index: 0, kind: input, shape index: {}]   ;;  %s688_s1 = inlined_call_operand.hbm [shape: f32[16,128], index: 1, kind: output, shape index: {}]  }
   0x1   :  { %8 = vsyncpa [#allocation7 + $0x1], 0 }
   0x2   :  { %9 = vsyncpa [#allocation8], 0 }
   0x3   :  { %11 = vsyncpa [#allocation8 + $0x1], 0  ;;  %s598_s6 = smov 0   ;;  %s600_s7 = smov 0  }
   0x4   :  { %s602_s8 = smov 0  }
   0x5 LB: > { %s348_s9 = sadd.s32 4294967295, %s578_s8   ;;  %s349_s10 = sadd.s32 4294967294, %s578_s8   ;;  %s578_s8 = sphi %s602_s8, %s17_s8   ;;  %s574_s7 = sphi %s600_s7, %s694_s7   ;;  %s570_s6 = sphi %s598_s6, %s693_s6  }
   0x6   : > { %s29_s11 = sadd.s32 1, %s574_s7  ;;  %p438_p2 = scmp.lt.s32.totalorder %s578_s8, 2 }
   0x7   : > { %p31_p1 = scmp.ge.s32.totalorder %s29_s11, 2  ;;  %p439_p3 = scmp.eq.s32.totalorder %s578_s8, 0 }
   0x8   : > { %s580_s13 = smov [#allocation6]   ;;  %s494_s17 = scalar_lea.hbm %s687_s0, 256 }
   0x9   : > { %s696_s11 = smov (%p31_p1, %s29_s11), 0  ;;  %p621_p4 = pnand %p439_p3, %p438_p2 }
   0xa   : > { %s118_s14 = sshll.u32 %s580_s13, 4  ;;  %p495_p6 = scmp.ne.s32.totalorder %s687_s0, %s494_s17  ;;  %s119_s14 = int_to_ptr.vmem [resolvable:$true] %s118_s14 }
   0xb   : > { %p496_p7 = pneg %p621_p4  ;;  %p501_p10 = scmp.lt.u32.totalorder %s494_s17, %s687_s0 }
   0xd   : > { %p497_p8 = pnand %p496_p7, %p495_p6 }
   0xf   : > { %p498_p9 = pneg %p497_p8 }
  0x11   : > { %p503_p11 = pnand %p501_p10, %p498_p9 }
  0x13   : > { %506 = shalt.err (!%p503_p11)
}
  0x14   : > { %s507_s22 = scalar_lea.vmem %s119_s14, 256  ;;  %s514_s23 = scalar_lea.vmem %s119_s14, 512 }
  0x15   : > { %p508_p12 = scmp.ne.s32.totalorder %s119_s14, %s507_s22  ;;  %p515_p2 = scmp.lt.s32.totalorder %s119_s14, %s119_s14 }
  0x16   : > { %p516_p3 = scmp.lt.s32.totalorder %s514_s23, %s507_s22 }
  0x17   : > { %p510_p13 = pnand %p508_p12, %p496_p7 }
  0x18   : > { %p517_p0 = por %p516_p3, %p515_p2 }
  0x19   : > { %p511_p1 = pneg %p510_p13 }
  0x1b   : > { %p518_p5 = pnand %p517_p0, %p511_p1 }
  0x1d   : > { %521 = shalt.err (!%p518_p5)
}
  0x1e   : > { %s581_s24 = smov 128   ;;  %s582_s25 = smov 8  }
  0x1f   : > { %433 = dma.hbm_to_vmem [thread:$0]  (!%p621_p4), %s687_s0, 256, %s119_s14, [#allocation7], %s581_s24, %s581_s24, %s582_s25  }
  0x20   : > { %p126_p6 = scmp.lt.s32.totalorder %s578_s8, 3  ;;  %p690_p8 = scmp.ge.s32.totalorder %s578_s8, 1 }
  0x22   : > { %p127_p7 = pnand %p690_p8, %p126_p6 }
  0x23   : > { %p440_p9 = scmp.eq.s32.totalorder (!%p127_p7), %s348_s9, 0 }
  0x24   : > { %130 = sbr.rel (%p127_p7) target bundleno = 426 (0x1aa), region = 24 }
  0x2b   : > { %561 = dma.done.wait (%p440_p9), [#allocation7], 256  }
  0x2c   : > { %563 = vsyncadd (%p440_p9), [#allocation7], 4294967040  ;;  %p160_p0 = scmp.eq.s32.totalorder %s570_s6, 0 }
  0x2d   : > { %v583_v0 = vmov (%p160_p0), inf   ;;  %v584_v1 = vmov (%p160_p0), -inf  }
  0x2e   : > { %165 = sbr.rel (!%p160_p0) target bundleno = 53 (0x35), region = 32  ;;  %166 = vst [vmem:[#allocation3] sm:$0xff] (%p160_p0), %v583_v0  ;;  %167 = vst [vmem:[#allocation4] sm:$0xff] (%p160_p0), %v584_v1 }
  0x35 PF: > { %p356_p5 = scmp.ne.s32.totalorder %s570_s6, 0 }
  0x36   : > { %v171_v2 = vld [vmem:[#allocation6] sm:$0xff] (!%p356_p5)  ;;  %v172_v3 = vld [vmem:[#allocation6 + $0x8] sm:$0xff] (!%p356_p5)  ;;  %v179_v6 = vld [vmem:[#allocation3] sm:$0xff] (!%p356_p5) }
  0x37   : > { %170 = sbr.rel (%p356_p5) target bundleno = 347 (0x15b), region = 36  ;;  %v173_v4 = vmax.f32 (!%p356_p5), %v171_v2, 0.01  ;;  %v174_v5 = vmax.f32 (!%p356_p5), %v172_v3, 0.01  ;;  %v183_v7 = vld [vmem:[#allocation4] sm:$0xff] (!%p356_p5) }
  0x39   : > { %178 = vst [vmem:[#allocation2 + $0x8] sm:$0xff] (!%p356_p5), %v174_v5  ;;  %v180_v8 = vmin.f32 (!%p356_p5), %v173_v4, %v174_v5  ;;  %177 = vst [vmem:[#allocation2] sm:$0xff] (!%p356_p5), %v173_v4  ;;  %v184_v9 = vmax.f32 (!%p356_p5), %v173_v4, %v174_v5 }
  0x3b   : > { %v181_v10 = vmin.f32 (!%p356_p5), %v179_v6, %v180_v8  ;;  %v185_v11 = vmax.f32 (!%p356_p5), %v183_v7, %v184_v9 }
  0x3d   : > { %182 = vst [vmem:[#allocation3] sm:$0xff] (!%p356_p5), %v181_v10  ;;  %476 = vlog2.f32 (!%p356_p5), %v181_v10  ;;  %186 = vst [vmem:[#allocation4] sm:$0xff] (!%p356_p5), %v185_v11 }
  0x3e   : > { %478 = vlog2.f32 %v185_v11 }
  0x47   : > { %v477_v12 = vpop.eup %476 }
  0x48   : > { %v479_v13 = vpop.eup %478  ;;  %v192_v14 = vmul.f32 0.6931472, %v477_v12 }
  0x49   : > { %v204_v15 = vmul.f32 0.6931472, %v479_v13 }
  0x4a   : > { %193 = vmin.xlane.f32.xlu0 %v192_v14 }
  0x4e   : > { %205 = vmax.xlane.f32.xlu0 %v204_v15 }
  0xd7   : > { %v194_v16 = vpop.xlane.xlu0 %193 }
  0xd8   : > { %v195_v17 = vrot.slane %v194_v16, 4 }
  0xda   : > { %v196_v18 = vmin.f32 %v194_v16, %v195_v17 }
  0xdb   : > { %v206_v19 = vpop.xlane.xlu0 %205 }
  0xdc   : > { %v197_v20 = vrot.slane %v196_v18, 2  ;;  %v207_v21 = vrot.slane %v206_v19, 4 }
  0xde   : > { %v208_v22 = vmax.f32 %v206_v19, %v207_v21  ;;  %v198_v23 = vmin.f32 %v196_v18, %v197_v20 }
  0xe0   : > { %v209_v24 = vrot.slane %v208_v22, 2  ;;  %v199_v25 = vrot.slane %v198_v23, 1 }
  0xe2   : > { %v210_v26 = vmax.f32 %v208_v22, %v209_v24  ;;  %v200_v27 = vmin.f32 %v198_v23, %v199_v25 }
  0xe4   : > { %364 = vpush %v200_v27  ;;  %v211_v28 = vrot.slane %v210_v26, 1 }
  0xe6   : > { %v212_v29 = vmax.f32 %v210_v26, %v211_v28 }
  0xe8   : > { %366 = vpush %v212_v29 }
 0x115   : > { %s365_s28 = spop %364 }
 0x116   : > { %215 = sst [smem:[#allocation5]] %s365_s28 }
 0x119   : > { %s367_s29 = spop %366 }
 0x11a   : > { %s216_s30 = ssub.f32 %s367_s29, %s365_s28 }
 0x11c   : > { %v217_v30 = vstv %s216_s30 }
 0x11d   : > { %480 = vrcp.f32 %v217_v30 }
 0x127   : > { %v481_v31 = vpop.eup %480 }
 0x128   : > { %368 = vpush %v481_v31 }
 0x159   : > { %s369_s2 = spop %368 }
 0x15a   : > { %221 = sst [smem:[#allocation5 + $0x1]] %s369_s2 }
 0x15b PF: > { %p357_p4 = scmp.ne.s32.totalorder %s570_s6, 1 }
 0x15c   : > { %s226_s3 = sld [smem:[#allocation5]] (!%p357_p4)  ;;  %s358_s4 = sld [smem:[#allocation5 + $0x1]] (!%p357_p4) }
 0x15d   : > { %225 = sbr.rel (%p357_p4) target bundleno = 402 (0x192), region = 44  ;;  %v230_v32 = vld [vmem:[#allocation2] sm:$0xff] (!%p357_p4)  ;;  %v231_v33 = vld [vmem:[#allocation2 + $0x8] sm:$0xff] (!%p357_p4) }
 0x15e   : > { %482 = vlog2.f32 (!%p357_p4), %v230_v32 }
 0x15f   : > { %484 = vlog2.f32 (!%p357_p4), %v231_v33 }
 0x162   : > { %v236_v35 = vstv (!%p357_p4), %s226_s3  ;;  %v239_v38 = vstv (!%p357_p4), %s358_s4 }
 0x168   : > { %v483_v34 = vpop.eup %482 }
 0x169   : > { %v485_v36 = vpop.eup %484  ;;  %v233_v37 = vmul.f32 0.6931472, %v483_v34 }
 0x16a   : > { %v235_v39 = vmul.f32 0.6931472, %v485_v36 }
 0x16b   : > { %v237_v40 = vsub.f32 %v233_v37, %v236_v35 }
 0x16c   : > { %v238_v41 = vsub.f32 %v235_v39, %v236_v35 }
 0x16d   : > { %v240_v42 = vmul.f32 %v239_v38, %v237_v40 }
 0x16e   : > { %v241_v43 = vmul.f32 %v239_v38, %v238_v41 }
 0x16f   : > { %v242_v44 = vmax.f32 %v240_v42, 0.0 }
 0x170   : > { %v243_v45 = vmax.f32 %v241_v43, 0.0 }
 0x171   : > { %v374_v46 = vand.u32 2147483647, %v242_v44  ;;  %vm378_vm0 = vcmp.lt.f32.partialorder %v242_v44, 0  ;;  %vm379_vm1 = vcmp.eq.f32.partialorder %v242_v44, 0  ;;  %vm391_vm5 = vcmp.ne.f32.partialorder %v242_v44, %v242_v44 }
 0x172   : > { %v400_v47 = vand.u32 2147483647, %v243_v45  ;;  %vm404_vm2 = vcmp.lt.f32.partialorder %v243_v45, 0  ;;  %vm405_vm4 = vcmp.eq.f32.partialorder %v243_v45, 0  ;;  %vm380_vm7 = vcmp.eq.f32.partialorder %v242_v44, 1065353216 }
 0x173   : > { %486 = vlog2.f32 %v374_v46  ;;  %vm383_vm3 = vcmp.eq.f32.partialorder %v374_v46, 2139095040  ;;  %vm417_vm8 = vcmp.ne.f32.partialorder %v243_v45, %v243_v45  ;;  %vm406_vm9 = vcmp.eq.f32.partialorder %v243_v45, 1065353216 }
 0x174   : > { %488 = vlog2.f32 %v400_v47  ;;  %vm409_vm6 = vcmp.eq.f32.partialorder %v400_v47, 2139095040 }
 0x17d   : > { %v487_v48 = vpop.eup %486 }
 0x17e   : > { %v489_v49 = vpop.eup %488  ;;  %v376_v50 = vmul.f32 0.42918456, %v487_v48 }
 0x17f   : > { %v402_v51 = vmul.f32 0.42918456, %v489_v49 }
 0x180   : > { %490 = vpow2.f32 %v376_v50 }
 0x181   : > { %492 = vpow2.f32 %v402_v51 }
 0x18a   : > { %v491_v52 = vpop.eup %490 }
 0x18b   : > { %v493_v53 = vpop.eup %492  ;;  %v384_v54 = vsel %vm378_vm0, 2143289344, %v491_v52 }
 0x18c   : > { %v385_v55 = vsel %vm379_vm1, 0, %v384_v54  ;;  %v410_v56 = vsel %vm404_vm2, 2143289344, %v493_v53 }
 0x18d   : > { %v390_v57 = vsel %vm383_vm3, 2139095040, %v385_v55  ;;  %v411_v58 = vsel %vm405_vm4, 0, %v410_v56 }
 0x18e   : > { %v394_v59 = vsel %vm391_vm5, 2143289344, %v390_v57  ;;  %v416_v60 = vsel %vm409_vm6, 2139095040, %v411_v58 }
 0x18f   : > { %v395_v61 = vsel %vm380_vm7, 1065353216, %v394_v59  ;;  %v420_v62 = vsel %vm417_vm8, 2143289344, %v416_v60 }
 0x190   : > { %246 = vst [vmem:[#allocation9] sm:$0xff] %v395_v61  ;;  %v421_v63 = vsel %vm406_vm9, 1065353216, %v420_v62 }
 0x191   : > { %247 = vst [vmem:[#allocation9 + $0x8] sm:$0xff] %v421_v63 }
 0x192 PF: > { %p652_p10 = scmp.eq.s32.totalorder %s348_s9, 1  ;;  %s585_s6 = smov [#allocation9]  }
 0x193   : > { %s263_s12 = sshll.u32 %s585_s6, 4  ;;  %s264_s12 = int_to_ptr.vmem [resolvable:$true] %s263_s12 }
 0x194   : > { %s522_s13 = scalar_lea.vmem %s264_s12, 256  ;;  %s528_s14 = scalar_lea.vmem %s264_s12, 512 }
 0x195   : > { %p523_p11 = scmp.ne.s32.totalorder %s264_s12, %s522_s13  ;;  %p529_p1 = scmp.lt.s32.totalorder %s264_s12, %s264_s12 }
 0x196   : > { %p530_p2 = scmp.lt.s32.totalorder %s528_s14, %s522_s13 }
 0x197   : > { %p524_p12 = pnand %p523_p11, %p652_p10 }
 0x198   : > { %p531_p3 = por %p530_p2, %p529_p1 }
 0x199   : > { %p525_p13 = pneg %p524_p12 }
 0x19b   : > { %p532_p6 = pnand %p531_p3, %p525_p13 }
 0x19d   : > { %535 = shalt.err (!%p532_p6)
}
 0x19e   : > { %s536_s16 = scalar_lea.hbm %s688_s1, 256 }
 0x19f   : > { %p537_p8 = scmp.ne.s32.totalorder %s688_s1, %s536_s16  ;;  %p542_p0 = scmp.lt.u32.totalorder %s536_s16, %s688_s1 }
 0x1a1   : > { %p538_p7 = pnand %p537_p8, %p652_p10 }
 0x1a3   : > { %p539_p9 = pneg %p538_p7 }
 0x1a5   : > { %p544_p5 = pnand %p542_p0, %p539_p9 }
 0x1a7   : > { %547 = shalt.err (!%p544_p5)
}
 0x1a8   : > { %s586_s21 = smov 128   ;;  %s587_s22 = smov 8  }
 0x1a9   : > { %427 = dma.vmem_to_hbm [thread:$0]  (%p652_p10), %s264_s12, 256, %s688_s1, [#allocation8], %s586_s21, %s586_s21, %s587_s22  }
 0x1aa PF: > { %p443_p4 = scmp.eq.s32.totalorder %s349_s10, 1  ;;  %p692_p11 = scmp.ge.s32.totalorder %s578_s8, 2 }
 0x1ac   : > { %p435_p12 = pnand %p443_p4, %p692_p11 }
 0x1ae   : > { %565 = dma.done.wait (!%p435_p12), [#allocation8], 256  }
 0x1af   : > { %567 = vsyncadd (!%p435_p12), [#allocation8], 4294967040  ;;  %s17_s8 = sadd.s32 1, %s578_s8   ;;  %s693_s6 = smov %s574_s7 }
 0x1b0   : > { %p14_p13 = scmp.ge.s32.totalorder %s17_s8, 4   ;;  %s694_s7 = smov %s696_s11 }
 0x1b2   :  { %16 = sbr.rel (!%p14_p13) target bundleno = 5 (0x5), region = 89 }
 0x1b9   :  { %284 = vsyncpa [#allocation7], 1 }
 0x1ba   :  { %286 = vsyncpa [#allocation7 + $0x1], 1 }
 0x1bb   :  { %287 = vsyncpa [#allocation8], 1 }
 0x1bc   :  { %289 = vsyncpa [#allocation8 + $0x1], 1 }

</bundles_post_ra>
